<compile_context>
chip_gen: v7x
topology: tpu7x:2x2x1
jax: 0.10.0
libtpu: 0.0.40
codegen_flags: <defaults>
</compile_context>

<pallas_src>
import jax
import jax.numpy as jnp
from jax.experimental import pallas as pl
from jax.experimental.pallas import tpu as pltpu


def _round_up(x, m):
    return ((x + m - 1) // m) * m


def _conv_bn_relu_kernel(w_ref, p_ref, scale_ref, bias_ref, o_ref):
    # w_ref:     (Cout, K)   conv weight, resident across the grid
    # p_ref:     (K, TM)     lane-dense patch tile (TM spatial positions)
    # scale_ref: (Cout, 1)   folded BN scale (all-ones if batch_norm=False)
    # bias_ref:  (Cout, 1)   folded BN bias  (zeros if batch_norm=False)
    # o_ref:     (Cout, TM)  lane-dense output tile
    acc = jnp.dot(w_ref[...], p_ref[...], preferred_element_type=jnp.float32)
    acc = acc * scale_ref[...] + bias_ref[...]
    o_ref[...] = jnp.maximum(acc, 0.0).astype(o_ref.dtype)


def convolution_downsample(x, weight, bn_scale, bn_bias, *, tile_m=1024):
    """x: (N, Cin, H, W) NCHW float32.
    weight: (Cout, Cin, 2, 2) PyTorch OIHW conv weight (bias=False).
    bn_scale, bn_bias: (Cout,) folded BatchNorm scale/bias.
    Returns (N, Cout, H//2, W//2) NCHW float32.
    """
    N, Cin, H, W = x.shape
    Cout = weight.shape[0]
    assert H % 2 == 0 and W % 2 == 0, (
        "ConvolutionDownsample (kernel=2, stride=2, VALID) expects even H, W")
    Ho, Wo = H // 2, W // 2
    Ms = Ho * Wo          # spatial positions per batch item
    K = Cin * 4           # contraction dim (ci, kh, kw)

    # Space-to-depth directly into the transposed, lane-dense layout
    # (N, K, Ho*Wo): the large spatial axis ends up as the lane (last) dim.
    patches = x.reshape(N, Cin, Ho, 2, Wo, 2)
    patches = patches.transpose(0, 1, 3, 5, 2, 4).reshape(N, K, Ms)

    # Tile the spatial axis: TM is a multiple of 128 (lane-dense, unmasked
    # stores).  VMEM per tile is tiny (K and Cout are small), so a large TM
    # mainly amortizes the ~0.35us per-grid-step overhead.
    tm = _round_up(min(tile_m, _round_up(Ms, 128)), 128)
    ms_pad = _round_up(Ms, tm)
    if ms_pad != Ms:
        patches = jnp.pad(patches, ((0, 0), (0, 0), (0, ms_pad - Ms)))

    w_mat = weight.reshape(Cout, K).astype(jnp.float32)      # (ci,kh,kw) order
    scale2d = bn_scale.reshape(Cout, 1).astype(jnp.float32)
    bias2d = bn_bias.reshape(Cout, 1).astype(jnp.float32)

    grid = (N, ms_pad // tm)

    out_flat = pl.pallas_call(
        _conv_bn_relu_kernel,
        out_shape=jax.ShapeDtypeStruct((N, Cout, ms_pad), jnp.float32),
        grid=grid,
        in_specs=[
            pl.BlockSpec((Cout, K), lambda n, m: (0, 0)),       # resident
            pl.BlockSpec((None, K, tm), lambda n, m: (n, 0, m)),
            pl.BlockSpec((Cout, 1), lambda n, m: (0, 0)),       # resident
            pl.BlockSpec((Cout, 1), lambda n, m: (0, 0)),       # resident
        ],
        out_specs=pl.BlockSpec((None, Cout, tm), lambda n, m: (n, 0, m)),
        compiler_params=pltpu.CompilerParams(
            dimension_semantics=("parallel", "parallel")),
    )(w_mat, patches, scale2d, bias2d)

    # (N, Cout, Ms_pad) -> drop tail padding -> NCHW.  No transpose needed.
    return out_flat[:, :, :Ms].reshape(N, Cout, Ho, Wo)


def _reference(x, weight, bn_scale, bn_bias):
    out = jax.lax.conv_general_dilated(
        x, weight, window_strides=(2, 2), padding="VALID",
        dimension_numbers=("NCHW", "OIHW", "NCHW"))
    out = out * bn_scale[None, :, None, None] + bn_bias[None, :, None, None]
    return jnp.maximum(out, 0.0)


if __name__ == "__main__":
    # Module config
    inplanes, outplanes, batch_norm = 4, 8, True
    N, H, W = 2, 16, 16

    key = jax.random.PRNGKey(0)
    kx, kw, kg, kb, km, kv = jax.random.split(key, 6)

    x = jax.random.normal(kx, (N, inplanes, H, W), dtype=jnp.float32)
    # Conv2d weight (Cout, Cin, 2, 2), bias=False
    weight = jax.random.normal(kw, (outplanes, inplanes, 2, 2),
                               dtype=jnp.float32) * 0.1

    if batch_norm:
        gamma = 1.0 + 0.1 * jax.random.normal(kg, (outplanes,), jnp.float32)
        beta = 0.1 * jax.random.normal(kb, (outplanes,), jnp.float32)
        running_mean = 0.05 * jax.random.normal(km, (outplanes,), jnp.float32)
        running_var = 1.0 + 0.1 * jnp.abs(
            jax.random.normal(kv, (outplanes,), jnp.float32))
        eps = 1e-5
        bn_scale = gamma / jnp.sqrt(running_var + eps)
        bn_bias = beta - running_mean * bn_scale
    else:
        bn_scale = jnp.ones((outplanes,), jnp.float32)
        bn_bias = jnp.zeros((outplanes,), jnp.float32)

    out = convolution_downsample(x, weight, bn_scale, bn_bias)
    out = jax.block_until_ready(out)

    ref = _reference(x, weight, bn_scale, bn_bias)
    assert out.shape == (N, outplanes, H // 2, W // 2)
    assert jnp.allclose(out, ref, atol=1e-4, rtol=1e-4)

    print("KERNEL_OK")
</pallas_src>

<mosaic_0001>
module attributes {stable_mosaic.version = 11 : i64} {
  func.func @_conv_bn_relu_kernel(%arg0: i32, %arg1: i32, %arg2: memref<8x16xf32, #tpu.memory_space<vmem>>, %arg3: memref<1x16x128xf32, #tpu.memory_space<vmem>>, %arg4: memref<8x1xf32, #tpu.memory_space<vmem>>, %arg5: memref<8x1xf32, #tpu.memory_space<vmem>>, %arg6: memref<1x8x128xf32, #tpu.memory_space<vmem>>) attributes {dimension_semantics = [#tpu.dimension_semantics<parallel>, #tpu.dimension_semantics<parallel>], iteration_bounds = array<i64: 2, 1>, scalar_prefetch = 0 : i64, scratch_operands = 0 : i64, tpu.core_type = #tpu.core_type<tc>, window_params = [{pipeline_mode = #tpu.pipeline_mode<synchronous>, transform_indices = @transform_0, window_bounds = array<i64: 8, 16>}, {transform_indices = @transform_1, window_bounds = array<i64: 1, 16, 128>}, {pipeline_mode = #tpu.pipeline_mode<synchronous>, transform_indices = @transform_2, window_bounds = array<i64: 8, 1>}, {pipeline_mode = #tpu.pipeline_mode<synchronous>, transform_indices = @transform_3, window_bounds = array<i64: 8, 1>}, {transform_indices = @transform_4, window_bounds = array<i64: 1, 8, 128>}]} {
    %c0 = arith.constant 0 : index
    %c0_0 = arith.constant 0 : index
    %0 = vector.load %arg2[%c0, %c0_0] : memref<8x16xf32, #tpu.memory_space<vmem>>, vector<8x16xf32>
    %c0_1 = arith.constant 0 : index
    %c0_2 = arith.constant 0 : index
    %c0_3 = arith.constant 0 : index
    %1 = vector.load %arg3[%c0_1, %c0_2, %c0_3] : memref<1x16x128xf32, #tpu.memory_space<vmem>>, vector<1x16x128xf32>
    %2 = vector.shape_cast %1 : vector<1x16x128xf32> to vector<16x128xf32>
    %cst = arith.constant dense<0.000000e+00> : vector<8x128xf32>
    %3 = tpu.matmul %0, %2, %cst {dimension_numbers = #tpu.dot_dimension_numbers<[1], [0], [0], [1], [0, 0, 1, 1], [], []>} : vector<8x16xf32>, vector<16x128xf32>, vector<8x128xf32> -> vector<8x128xf32>
    %c0_4 = arith.constant 0 : index
    %c0_5 = arith.constant 0 : index
    %4 = vector.load %arg4[%c0_4, %c0_5] : memref<8x1xf32, #tpu.memory_space<vmem>>, vector<8x1xf32>
    %5 = vector.broadcast %4 : vector<8x1xf32> to vector<8x128xf32>
    %6 = arith.mulf %3, %5 : vector<8x128xf32>
    %c0_6 = arith.constant 0 : index
    %c0_7 = arith.constant 0 : index
    %7 = vector.load %arg5[%c0_6, %c0_7] : memref<8x1xf32, #tpu.memory_space<vmem>>, vector<8x1xf32>
    %8 = vector.broadcast %7 : vector<8x1xf32> to vector<8x128xf32>
    %9 = arith.addf %6, %8 : vector<8x128xf32>
    %cst_8 = arith.constant 0.000000e+00 : f32
    %10 = vector.broadcast %cst_8 : f32 to vector<8x128xf32>
    %11 = arith.maximumf %9, %10 : vector<8x128xf32>
    %c0_9 = arith.constant 0 : index
    %c0_10 = arith.constant 0 : index
    %c0_11 = arith.constant 0 : index
    %12 = vector.load %arg6[%c0_9, %c0_10, %c0_11] : memref<1x8x128xf32, #tpu.memory_space<vmem>>, vector<1x8x128xf32>
    %13 = vector.shape_cast %12 : vector<1x8x128xf32> to vector<8x128xf32>
    %14 = vector.shape_cast %11 : vector<8x128xf32> to vector<1x8x128xf32>
    tpu.vector_store %arg6[%c0_9, %c0_10, %c0_11], %14 {strides = array<i32>} : memref<1x8x128xf32, #tpu.memory_space<vmem>>, vector<1x8x128xf32>,
    return
  }
  func.func @transform_0(%arg0: i32, %arg1: i32) -> (i32, i32) {
    %c0_i32 = arith.constant 0 : i32
    %c0_i32_0 = arith.constant 0 : i32
    %c0_i32_1 = arith.constant 0 : i32
    return %c0_i32, %c0_i32_0 : i32, i32
  }
  func.func @transform_1(%arg0: i32, %arg1: i32) -> (i32, i32, i32) {
    %c0_i32 = arith.constant 0 : i32
    %c0_i32_0 = arith.constant 0 : i32
    return %arg0, %c0_i32, %arg1 : i32, i32, i32
  }
  func.func @transform_2(%arg0: i32, %arg1: i32) -> (i32, i32) {
    %c0_i32 = arith.constant 0 : i32
    %c0_i32_0 = arith.constant 0 : i32
    %c0_i32_1 = arith.constant 0 : i32
    return %c0_i32, %c0_i32_0 : i32, i32
  }
  func.func @transform_3(%arg0: i32, %arg1: i32) -> (i32, i32) {
    %c0_i32 = arith.constant 0 : i32
    %c0_i32_0 = arith.constant 0 : i32
    %c0_i32_1 = arith.constant 0 : i32
    return %c0_i32, %c0_i32_0 : i32, i32
  }
  func.func @transform_4(%arg0: i32, %arg1: i32) -> (i32, i32, i32) {
    %c0_i32 = arith.constant 0 : i32
    %c0_i32_0 = arith.constant 0 : i32
    return %arg0, %c0_i32, %arg1 : i32, i32, i32
  }
}

</mosaic_0001>

<bundles_post_ra>
// kernel: tpu_custom_call.1
= control target key start
LH: loop header
LB: loop body
LE: loop exit
PB: predicated region body
PF: predicated region fallthrough
CT: control target
= control target key end

     0   :  { %9 = vsyncpa [#allocation3], 0  ;;  %s850_s0 = inlined_call_operand.vmem [shape: f32[8,16], index: 0, kind: input, shape index: {}]   ;;  %s851_s1 = inlined_call_operand.hbm [shape: f32[2,16,128], index: 1, kind: input, shape index: {}]   ;;  %s852_s2 = inlined_call_operand.vmem [shape: f32[8,1], index: 2, kind: input, shape index: {}]   ;;  %s853_s3 = inlined_call_operand.vmem [shape: f32[8,1], index: 3, kind: input, shape index: {}]   ;;  %s854_s4 = inlined_call_operand.hbm [shape: f32[2,8,128], index: 4, kind: output, shape index: {}]  }
   0x1   :  { %11 = vsyncpa [#allocation3 + $0x1], 0 }
   0x2   :  { %12 = vsyncpa [#allocation4], 0 }
   0x3   :  { %14 = vsyncpa [#allocation4 + $0x1], 0  ;;  %s667_s15 = smov 0   ;;  %s669_s16 = smov 0  }
   0x4   :  { %s671_s17 = smov 0   ;;  %s673_s18 = smov 0  }
   0x5   :  { %s675_s19 = smov 0   ;;  %s677_s20 = smov 0  }
   0x6 LB: > { %s422_s21 = sadd.s32 4294967295, %s632_s20   ;;  %s423_s22 = sadd.s32 4294967294, %s632_s20   ;;  %s632_s20 = sphi %s677_s20, %s20_s20   ;;  %s628_s19 = sphi %s675_s19, %s869_s19   ;;  %s624_s18 = sphi %s673_s18, %s868_s18   ;;  %s620_s17 = sphi %s671_s17, %s867_s17   ;;  %s616_s16 = sphi %s669_s16, %s866_s16   ;;  %s612_s15 = sphi %s667_s15, %s865_s15  }
   0x7   : > { %s32_s23 = sadd.s32 1, %s628_s19  ;;  %s62_s24 = sadd.s32 1, %s620_s17 }
   0x8   : > { %p34_p0 = scmp.ge.s32.totalorder %s32_s23, 2  ;;  %p69_p1 = scmp.ne.s32.totalorder %s620_s17, %s616_s16 }
   0x9   : > { %p70_p2 = scmp.eq.s32.totalorder %s632_s20, 0  ;;  %p75_p3 = scmp.ne.s32.totalorder %s616_s16, %s612_s15 }
   0xa   : > { %s871_s23 = smov (%p34_p0, %s32_s23), 0  ;;  %p76_p5 = scmp.eq.s32.totalorder %s422_s21, 0 }
   0xb   : > { %p708_p4 = por %p70_p2, %p69_p1  ;;  %s57_s26 = ssub.s32 %s628_s19, %s871_s23 }
   0xc   : > { %p143_p6 = scmp.eq.s32.totalorder %s422_s21, 1  ;;  %p60_p7 = scmp.eq.s32.totalorder %s57_s26, 0 }
   0xd   : > { %p714_p8 = por %p76_p5, %p75_p3  ;;  %p149_p10 = scmp.eq.s32.totalorder %s423_s22, 1 }
   0xe   : > { %p718_p9 = por %p143_p6, %p69_p1  ;;  %p463_p13 = scmp.lt.s32.totalorder %s632_s20, 2 }
   0xf   : > { %s723_s29 = scalar_select %p60_p7, %s620_s17, %s62_s24  }
  0x10   : > { %s858_s28 = scalar_select %p718_p9, 1, 0 }
  0x11   : > { %p725_p11 = por %p149_p10, %p75_p3  ;;  %s178_s5 = sand.u32 1, %s620_s17  }
  0x12   : > { %s426_s6 = sshll.u32 %s178_s5, 4  ;;  %s437_s7 = sshll.u32 %s628_s19, 8 }
  0x13   : > { %s859_s30 = scalar_select %p725_p11, 1, 0 }
  0x14   : > { %s736_s10 = scalar_lea.hbm %s851_s1, %s437_s7  ;;  %s182_s11 = scalar_lea.vmem [#allocation2], %s426_s6 }
  0x15   : > { %s190_s12 = sshll.u32 %s182_s11, 4  ;;  %p742_p0 = pnand %p463_p13, %p708_p4  ;;  %s738_s12 = int_to_ptr.vmem [resolvable:$true] %s190_s12 }
  0x16   : > { %s747_s14 = scalar_lea.sflag [#allocation3], %s178_s5  ;;  %s520_s21 = scalar_lea.hbm %s736_s10, 256 }
  0x17   : > { %p521_p2 = scmp.ne.s32.totalorder %s736_s10, %s520_s21  ;;  %p522_p3 = pneg %p742_p0 }
  0x18   : > { %s525_s25 = scalar_lea.hbm %s851_s1, 512  ;;  %p526_p4 = scmp.lt.u32.totalorder %s736_s10, %s851_s1 }
  0x19   : > { %p523_p5 = pnand %p522_p3, %p521_p2  ;;  %p527_p7 = scmp.lt.u32.totalorder %s525_s25, %s520_s21 }
  0x1a   : > { %p529_p13 = scmp.lt.u32.totalorder %s520_s21, %s736_s10 }
  0x1b   : > { %p524_p6 = pneg %p523_p5  ;;  %p528_p10 = por %p527_p7, %p526_p4 }
  0x1d   : > { %p530_p12 = por %p529_p13, %p528_p10 }
  0x1f   : > { %p531_p1 = pnand %p530_p12, %p524_p6 }
  0x21   : > { %534 = shalt.err (!%p531_p1)
}
  0x22   : > { %s535_s5 = scalar_lea.vmem %s738_s12, 256  ;;  %s634_s7 = smov [#allocation2]  }
  0x23   : > { %p536_p2 = scmp.ne.s32.totalorder %s738_s12, %s535_s5  ;;  %s540_s8 = sshll.u32 %s634_s7, 4  ;;  %s541_s8 = int_to_ptr.vmem [resolvable:$false] %s540_s8 }
  0x24   : > { %s542_s9 = scalar_lea.vmem %s541_s8, 512  ;;  %p543_p9 = scmp.lt.s32.totalorder %s738_s12, %s541_s8 }
  0x25   : > { %p538_p5 = pnand %p536_p2, %p522_p3  ;;  %p544_p4 = scmp.lt.s32.totalorder %s542_s9, %s535_s5 }
  0x27   : > { %p539_p11 = pneg %p538_p5  ;;  %p545_p7 = por %p544_p4, %p543_p9 }
  0x29   : > { %p546_p10 = pnand %p545_p7, %p539_p11 }
  0x2b   : > { %549 = shalt.err (!%p546_p10)
}
  0x2c   : > { %s635_s11 = smov 128   ;;  %s636_s21 = smov 8  }
  0x2d   : > { %458 = dma.hbm_to_vmem [thread:$0]  (!%p742_p0), %s736_s10, 256, %s738_s12, %s747_s14, %s635_s11, %s635_s11, %s636_s21  }
  0x2e   : > { %p198_p12 = scmp.lt.s32.totalorder %s632_s20, 3  ;;  %p861_p1 = scmp.ge.s32.totalorder %s632_s20, 1 }
  0x30   : > { %p199_p3 = pnand %p861_p1, %p198_p12 }
  0x31   : > { %s779_s22 = sand.u32 (!%p199_p3), 1, %s616_s16  }
  0x32   : > { %202 = sbr.rel (%p199_p3) target bundleno = 297 (0x129), region = 36  ;;  %s430_s24 = sshll.u32 (!%p199_p3), %s779_s22, 4 }
  0x33   : > { %s205_s25 = scalar_lea.sflag (!%p199_p3), [#allocation3], %s779_s22  ;;  %s208_s26 = scalar_lea.vmem (!%p199_p3), [#allocation2], %s430_s24 }
  0x39   : > { %603 = dma.done.wait (%p714_p8), %s205_s25, 256  }
  0x3a   : > { %605 = vsyncadd (%p714_p8), %s205_s25, 4294967040  ;;  %v637_v0 = vmov 0.0|0.0   ;;  %vm638_vm0 = vmmov 0   ;;  %v639_v1 = vmov 0.0   ;;  %v640_v2 = vmov 0   ;;  %v234_v3 = vld [vmem:[%s208_s26] sm:$0xff] }
  0x3b   : > { %448 = vmatprep.subr.bf16.mxu0 %v637_v0  ;;  %445 = vmatprep.mubr.msk.f32.mxu0 %vm638_vm0, %v639_v1  ;;  %v235_v4 = vld [vmem:[%s208_s26 + $0x8] sm:$0xff]  ;;  %v310_v6 = vld [vmem:[%s852_s2] sm:$0xff]  ;;  %vm236_vm1 = vcmask 130048   ;;  %s431_s5 = sshll.u32 %s779_s22, 3  ;;  %s434_s7 = sshll.u32 %s624_s18, 7 }
  0x3c   : > { %519 = vset.pattern.permute.xlu0 %v640_v2  ;;  %v449_v5 = vpack.c.bf16 %v235_v4, %v234_v3  ;;  %v233_v7 = vld [vmem:[%s850_s0] sm:$0xff]  ;;  %s232_s8 = scalar_lea.vmem [#allocation5], %s431_s5  ;;  %s801_s24 = scalar_lea.hbm %s854_s4, %s434_s7 }
  0x3d   : > { %313 = vperm.xlu0 %519, %v310_v6   ;;  %v317_v8 = vld [vmem:[%s853_s3] sm:$0xff]  ;;  %s341_s9 = sshll.u32 %s232_s8, 4  ;;  %s327_s25 = scalar_lea.sflag [#allocation4], %s779_s22  ;;  %s803_s9 = int_to_ptr.vmem [resolvable:$true] %s341_s9 }
  0x3e   : > { %450 = vmatpush3.bf16.msra.mxu0 %v449_v5  ;;  %s550_s26 = scalar_lea.vmem %s803_s9, 128  ;;  %p862_p9 = scmp.ne.s32.totalorder %s858_s28, 0 }
  0x3f   : > { %p551_p8 = scmp.ne.s32.totalorder %s803_s9, %s550_s26  ;;  %s641_s18 = smov [#allocation5]  }
  0x40   : > { %s554_s10 = sshll.u32 %s641_s18, 4  ;;  %s555_s10 = int_to_ptr.vmem [resolvable:$false] %s554_s10 }
  0x41   : > { %446 = vmatmul.mubr.msk.f32.vlgmr.msra.gmra.mrb[0].mxu0 %vm236_vm1, %v233_v7  ;;  %320 = vperm.xlu0 %519, %v317_v8   ;;  %p552_p11 = pnand %p551_p8, %p862_p9  ;;  %s556_s12 = scalar_lea.vmem %s555_s10, 256 }
  0x42   : > { %p557_p6 = scmp.lt.s32.totalorder %s803_s9, %s555_s10  ;;  %p558_p13 = scmp.lt.s32.totalorder %s556_s12, %s550_s26 }
  0x43   : > { %p553_p0 = pneg %p552_p11 }
  0x44   : > { %p559_p2 = por %p558_p13, %p557_p6 }
  0x46   : > { %p560_p5 = pnand %p559_p2, %p553_p0 }
  0xbc   : > { %v314_v9 = vpop.permute.xlu0 %313 }
  0xc0   : > { %v321_v13 = vpop.permute.xlu0 %320 }
 0x114   : > { %v306_v10 = vpop.f32.mrb[0].mxu0 }
 0x115   : > { %v316_v11 = vmul.f32 %v314_v9, %v306_v10  ;;  %v447_v12 = vpop.f32.mrb[1].mxu0 }
 0x117   : > { %v323_v14 = vadd.f32 %v321_v13, %v316_v11 }
 0x119   : > { %v324_v15 = vmax.f32 %v323_v14, 0.0 }
 0x11b   : > { %325 = vst [vmem:[%s232_s8] sm:$0xff] %v324_v15 }
 0x11c   : > { %563 = shalt.err (!%p560_p5)
}
 0x11d   : > { %s564_s22 = scalar_lea.hbm %s801_s24, 128  ;;  %s568_s14 = scalar_lea.hbm %s854_s4, 256 }
 0x11e   : > { %p565_p4 = scmp.ne.s32.totalorder %s801_s24, %s564_s22  ;;  %p569_p12 = scmp.lt.u32.totalorder %s801_s24, %s854_s4 }
 0x11f   : > { %p570_p1 = scmp.lt.u32.totalorder %s568_s14, %s564_s22  ;;  %p572_p8 = scmp.lt.u32.totalorder %s564_s22, %s801_s24 }
 0x120   : > { %p566_p7 = pnand %p565_p4, %p862_p9 }
 0x121   : > { %p571_p3 = por %p570_p1, %p569_p12 }
 0x122   : > { %p567_p10 = pneg %p566_p7 }
 0x123   : > { %p573_p11 = por %p572_p8, %p571_p3 }
 0x125   : > { %p574_p0 = pnand %p573_p11, %p567_p10 }
 0x127   : > { %577 = shalt.err (!%p574_p0)
}
 0x128   : > { %453 = dma.vmem_to_hbm [thread:$0]  (%p862_p9), %s803_s9, 128, %s801_s24, %s327_s25  }
 0x129 PF: > { %s353_s7 = sand.u32 1, %s612_s15   ;;  %p863_p6 = scmp.ne.s32.totalorder %s859_s30, 0 }
 0x12a   : > { %p864_p13 = scmp.ge.s32.totalorder %s632_s20, 2  ;;  %s354_s8 = scalar_lea.sflag [#allocation4], %s353_s7 }
 0x12c   : > { %p460_p2 = pnand %p864_p13, %p863_p6 }
 0x12e   : > { %607 = dma.done.wait (!%p460_p2), %s354_s8, 128  }
 0x12f   : > { %609 = vsyncadd (!%p460_p2), %s354_s8, 4294967168  ;;  %s20_s20 = sadd.s32 1, %s632_s20   ;;  %s865_s15 = smov %s616_s16 }
 0x130   : > { %p17_p5 = scmp.ge.s32.totalorder %s20_s20, 4   ;;  %s866_s16 = smov %s620_s17 }
 0x131   : > { %s867_s17 = smov %s723_s29  ;;  %s868_s18 = smov %s628_s19 }
 0x132   : > { %s869_s19 = smov %s871_s23  ;;  %19 = sbr.rel (!%p17_p5) target bundleno = 6 (0x6), region = 81 }
 0x139   :  { %359 = vsyncpa [#allocation3], 1 }
 0x13a   :  { %361 = vsyncpa [#allocation3 + $0x1], 1 }
 0x13b   :  { %362 = vsyncpa [#allocation4], 1 }
 0x13c   :  { %364 = vsyncpa [#allocation4 + $0x1], 1 }

</bundles_post_ra>
